<compile_context>
chip_gen: v7x
topology: tpu7x:2x2x1
jax: 0.10.0
libtpu: 0.0.40
codegen_flags: <defaults>
</compile_context>

<pallas_src>
import jax
import jax.numpy as jnp
import numpy as np
from jax.experimental import pallas as pl
from jax.experimental.pallas import tpu as pltpu


def _round_up(n, m):
    return ((n + m - 1) // m) * m


def _soft_q_kernel(xa_ref, w1_ref, b1_ref, w2_ref, b2_ref, w3_ref, b3_ref,
                   out_ref):
    mm_dtype = w1_ref.dtype    # bf16 on v6e/v7x (f32 MXU accumulate), or f32
    act_dtype = b1_ref.dtype   # bf16 bias/ReLU on v6e/v7x, f32 on v5e

    # ---- Layer 1: packed [obs|act] @ W1, bias + ReLU ---------------------
    h = jnp.dot(xa_ref[...].astype(mm_dtype), w1_ref[...],
                preferred_element_type=jnp.float32)
    h = jnp.maximum(h.astype(act_dtype) + b1_ref[...], 0).astype(mm_dtype)

    # ---- Layer 2: Linear -> ReLU -----------------------------------------
    h = jnp.dot(h, w2_ref[...], preferred_element_type=jnp.float32)
    h = jnp.maximum(h.astype(act_dtype) + b2_ref[...], 0)

    # ---- Head: [256] -> 1 as VPU mul + lane (XLU) reduction ---------------
    q = jnp.sum(h.astype(jnp.float32) * w3_ref[...], axis=-1, keepdims=True)
    q = q + b3_ref[...]                                   # (tb, 1) f32

    # Lane-dense store: (tb, 1) column -> (1, tb) row (cheap XLU transpose),
    # so the output writeback is unmasked full-lane vst.
    out_ref[...] = jnp.transpose(q).astype(out_ref.dtype)


def soft_q_forward(x, a, params, *, block_b=1024):
    """SoftQNetwork forward. x: [B, obs_dim], a: [B, act_dim] -> [B, 1]."""
    w1, b1, w2, b2, w3_row, b3 = params
    B = x.shape[0]
    ins_pad = w1.shape[0]

    # Pack obs + act (+ zero K-padding) into a single layer-1 operand.
    k_extra = ins_pad - (x.shape[1] + a.shape[1])
    parts = [x, a]
    if k_extra:
        parts.append(jnp.zeros((B, k_extra), x.dtype))
    xa = jnp.concatenate(parts, axis=1)

    # Batch tiling:
    #  * small B  -> one resident block (zero pipeline overhead),
    #  * large B  -> big row tiles (amortize ~0.35 us/step overhead), capped
    #    so the parallel grid has >= 2 steps (keeps both v7x cores busy) and
    #    is a multiple of 128 (lane-dense output block constraint).
    if B <= 256:
        tb = _round_up(B, 8)
    else:
        tb = min(block_b, _round_up(pl.cdiv(B, 2), 128))
        tb = max(128, (tb // 128) * 128)
    b_pad = _round_up(B, tb)
    if b_pad != B:
        xa = jnp.pad(xa, ((0, b_pad - B), (0, 0)))
    grid = (b_pad // tb,)

    out = pl.pallas_call(
        _soft_q_kernel,
        out_shape=jax.ShapeDtypeStruct((1, b_pad), jnp.float32),
        grid_spec=pltpu.PrefetchScalarGridSpec(
            num_scalar_prefetch=0,
            grid=grid,
            in_specs=[
                pl.BlockSpec((tb, ins_pad), lambda i: (i, 0)),   # packed x|a
                pl.BlockSpec(w1.shape, lambda i: (0, 0)),        # weights:
                pl.BlockSpec(b1.shape, lambda i: (0, 0)),        #   constant
                pl.BlockSpec(w2.shape, lambda i: (0, 0)),        #   index map
                pl.BlockSpec(b2.shape, lambda i: (0, 0)),        #   => stay
                pl.BlockSpec(w3_row.shape, lambda i: (0, 0)),    #   resident
                pl.BlockSpec(b3.shape, lambda i: (0, 0)),
            ],
            out_specs=pl.BlockSpec((1, tb), lambda i: (0, i)),   # lane-dense
        ),
        compiler_params=pltpu.CompilerParams(
            dimension_semantics=("parallel",),
        ),
    )(xa, w1, b1, w2, b2, w3_row, b3)

    # Padded rows (b_pad > B) contain garbage; slice before reshaping.
    return out[0, :B].reshape(B, 1)


def init_params(key, obs_dim, act_dim, net_arch=(256, 256),
                matmul_dtype=jnp.bfloat16, act_dtype=None):
    """PyTorch nn.Linear-style init (U[-1/sqrt(fan_in), +1/sqrt(fan_in)]).

    Kernel layout:
      w1 [ins_pad, H1], w2 [H1, H2]      (matmul_dtype; zero rows pad ins->ins_pad)
      b1 [1, H1], b2 [1, H2]             (act_dtype: bf16 on v6e/v7x, f32 on v5e)
      w3_row [1, H2], b3 [1, 1]          (float32, VPU head)
    """
    if act_dtype is None:
        act_dtype = matmul_dtype
    ins = obs_dim + act_dim
    ins_pad = _round_up(ins, 8)
    dims = [ins, *net_arch, 1]
    raw = []
    for i in range(len(dims) - 1):
        fan_in, fan_out = dims[i], dims[i + 1]
        key, kw, kb = jax.random.split(key, 3)
        bound = 1.0 / np.sqrt(fan_in)
        w = jax.random.uniform(kw, (fan_in, fan_out), jnp.float32, -bound, bound)
        b = jax.random.uniform(kb, (1, fan_out), jnp.float32, -bound, bound)
        raw.append((w, b))
    (w1, b1), (w2, b2), (w3, b3) = raw
    w1p = jnp.zeros((ins_pad, net_arch[0]), jnp.float32).at[:ins].set(w1)
    return (
        w1p.astype(matmul_dtype),          # [ins_pad, H1]
        b1.astype(act_dtype),              # [1, H1]
        w2.astype(matmul_dtype),           # [H1, H2]
        b2.astype(act_dtype),              # [1, H2]
        w3.T.astype(jnp.float32),          # [1, H2] row for the VPU head
        b3,                                # [1, 1] f32
    )


def soft_q_reference(x, a, params):
    """Pure-JAX reference mirroring the kernel's numerics (same quantized ops)."""
    w1, b1, w2, b2, w3_row, b3 = params
    mm = w1.dtype
    act = b1.dtype
    ins_pad = w1.shape[0]
    k_extra = ins_pad - (x.shape[1] + a.shape[1])
    parts = [x, a]
    if k_extra:
        parts.append(jnp.zeros((x.shape[0], k_extra), x.dtype))
    xa = jnp.concatenate(parts, axis=1)
    h = jnp.dot(xa.astype(mm), w1, preferred_element_type=jnp.float32)
    h = jnp.maximum(h.astype(act) + b1, 0).astype(mm)
    h = jnp.dot(h, w2, preferred_element_type=jnp.float32)
    h = jnp.maximum(h.astype(act) + b2, 0)
    return jnp.sum(h.astype(jnp.float32) * w3_row, axis=-1, keepdims=True) + b3


if __name__ == "__main__":
    # Small shapes consistent with the module: flat obs of dim 16, action dim 4.
    batch = 8
    obs_dim = 16
    act_dim = 4

    key = jax.random.PRNGKey(0)
    kx, ka, kp, kx2, ka2 = jax.random.split(key, 5)
    x = jax.random.normal(kx, (batch, obs_dim), jnp.float32)
    a = jax.random.normal(ka, (batch, act_dim), jnp.float32)

    # bf16 matmul operands + bf16 bias/ReLU (recommended for v6e/v7x); pass
    # matmul_dtype=act_dtype=jnp.float32 for v5e or near-exact PyTorch parity.
    params = init_params(kp, obs_dim, act_dim, net_arch=(256, 256),
                         matmul_dtype=jnp.bfloat16)

    # Small-batch path (single resident block, 1 grid step).
    q = soft_q_forward(x, a, params)
    jax.block_until_ready(q)
    q_ref = soft_q_reference(x, a, params)
    np.testing.assert_allclose(np.asarray(q), np.asarray(q_ref),
                               rtol=5e-3, atol=5e-3)
    assert q.shape == (batch, 1)

    # Training-size batch path (padding + multi-step parallel grid +
    # lane-dense output writeback).
    big_b = 1000
    xb = jax.random.normal(kx2, (big_b, obs_dim), jnp.float32)
    ab = jax.random.normal(ka2, (big_b, act_dim), jnp.float32)
    qb = soft_q_forward(xb, ab, params)
    jax.block_until_ready(qb)
    qb_ref = soft_q_reference(xb, ab, params)
    np.testing.assert_allclose(np.asarray(qb), np.asarray(qb_ref),
                               rtol=5e-3, atol=5e-3)
    assert qb.shape == (big_b, 1)

    print("KERNEL_OK")
</pallas_src>

<mosaic_0001>
module attributes {stable_mosaic.version = 11 : i64} {
  func.func @_soft_q_kernel(%arg0: i32, %arg1: memref<8x24xf32, #tpu.memory_space<vmem>>, %arg2: memref<24x256xbf16, #tpu.memory_space<vmem>>, %arg3: memref<1x256xbf16, #tpu.memory_space<vmem>>, %arg4: memref<256x256xbf16, #tpu.memory_space<vmem>>, %arg5: memref<1x256xbf16, #tpu.memory_space<vmem>>, %arg6: memref<1x256xf32, #tpu.memory_space<vmem>>, %arg7: memref<1x1xf32, #tpu.memory_space<vmem>>, %arg8: memref<1x8xf32, #tpu.memory_space<vmem>>) attributes {dimension_semantics = [#tpu.dimension_semantics<parallel>], iteration_bounds = array<i64: 1>, scalar_prefetch = 0 : i64, scratch_operands = 0 : i64, tpu.core_type = #tpu.core_type<tc>, window_params = [{transform_indices = @transform_0, window_bounds = array<i64: 8, 24>}, {pipeline_mode = #tpu.pipeline_mode<synchronous>, transform_indices = @transform_1, window_bounds = array<i64: 24, 256>}, {pipeline_mode = #tpu.pipeline_mode<synchronous>, transform_indices = @transform_2, window_bounds = array<i64: 1, 256>}, {pipeline_mode = #tpu.pipeline_mode<synchronous>, transform_indices = @transform_3, window_bounds = array<i64: 256, 256>}, {pipeline_mode = #tpu.pipeline_mode<synchronous>, transform_indices = @transform_4, window_bounds = array<i64: 1, 256>}, {pipeline_mode = #tpu.pipeline_mode<synchronous>, transform_indices = @transform_5, window_bounds = array<i64: 1, 256>}, {pipeline_mode = #tpu.pipeline_mode<synchronous>, transform_indices = @transform_6, window_bounds = array<i64: 1, 1>}, {transform_indices = @transform_7, window_bounds = array<i64: 1, 8>}]} {
    %c0 = arith.constant 0 : index
    %c0_0 = arith.constant 0 : index
    %0 = vector.load %arg1[%c0, %c0_0] : memref<8x24xf32, #tpu.memory_space<vmem>>, vector<8x24xf32>
    %1 = arith.truncf %0 : vector<8x24xf32> to vector<8x24xbf16>
    %c0_1 = arith.constant 0 : index
    %c0_2 = arith.constant 0 : index
    %2 = vector.load %arg2[%c0_1, %c0_2] : memref<24x256xbf16, #tpu.memory_space<vmem>>, vector<24x256xbf16>
    %cst = arith.constant dense<0.000000e+00> : vector<8x256xf32>
    %3 = tpu.matmul %1, %2, %cst {dimension_numbers = #tpu.dot_dimension_numbers<[1], [0], [0], [1], [0, 0, 1, 1], [], []>} : vector<8x24xbf16>, vector<24x256xbf16>, vector<8x256xf32> -> vector<8x256xf32>
    %4 = arith.truncf %3 : vector<8x256xf32> to vector<8x256xbf16>
    %c0_3 = arith.constant 0 : index
    %c0_4 = arith.constant 0 : index
    %5 = vector.load %arg3[%c0_3, %c0_4] : memref<1x256xbf16, #tpu.memory_space<vmem>>, vector<1x256xbf16>
    %6 = vector.broadcast %5 : vector<1x256xbf16> to vector<8x256xbf16>
    %7 = arith.addf %4, %6 : vector<8x256xbf16>
    %cst_5 = arith.constant 0.000000e+00 : bf16
    %8 = vector.broadcast %cst_5 : bf16 to vector<8x256xbf16>
    %9 = arith.maximumf %7, %8 : vector<8x256xbf16>
    %c0_6 = arith.constant 0 : index
    %c0_7 = arith.constant 0 : index
    %10 = vector.load %arg4[%c0_6, %c0_7] : memref<256x256xbf16, #tpu.memory_space<vmem>>, vector<256x256xbf16>
    %cst_8 = arith.constant dense<0.000000e+00> : vector<8x256xf32>
    %11 = tpu.matmul %9, %10, %cst_8 {dimension_numbers = #tpu.dot_dimension_numbers<[1], [0], [0], [1], [0, 0, 1, 1], [], []>} : vector<8x256xbf16>, vector<256x256xbf16>, vector<8x256xf32> -> vector<8x256xf32>
    %12 = arith.truncf %11 : vector<8x256xf32> to vector<8x256xbf16>
    %c0_9 = arith.constant 0 : index
    %c0_10 = arith.constant 0 : index
    %13 = vector.load %arg5[%c0_9, %c0_10] : memref<1x256xbf16, #tpu.memory_space<vmem>>, vector<1x256xbf16>
    %14 = vector.broadcast %13 : vector<1x256xbf16> to vector<8x256xbf16>
    %15 = arith.addf %12, %14 : vector<8x256xbf16>
    %cst_11 = arith.constant 0.000000e+00 : bf16
    %16 = vector.broadcast %cst_11 : bf16 to vector<8x256xbf16>
    %17 = arith.maximumf %15, %16 : vector<8x256xbf16>
    %18 = arith.extf %17 : vector<8x256xbf16> to vector<8x256xf32>
    %c0_12 = arith.constant 0 : index
    %c0_13 = arith.constant 0 : index
    %19 = vector.load %arg6[%c0_12, %c0_13] : memref<1x256xf32, #tpu.memory_space<vmem>>, vector<1x256xf32>
    %20 = vector.broadcast %19 : vector<1x256xf32> to vector<8x256xf32>
    %21 = arith.mulf %18, %20 : vector<8x256xf32>
    %cst_14 = arith.constant dense<0.000000e+00> : vector<8xf32>
    %22 = vector.multi_reduction <add>, %21, %cst_14 [1] : vector<8x256xf32> to vector<8xf32>
    %23 = vector.shape_cast %22 : vector<8xf32> to vector<8x1xf32>
    %c0_15 = arith.constant 0 : index
    %c0_16 = arith.constant 0 : index
    %24 = vector.load %arg7[%c0_15, %c0_16] : memref<1x1xf32, #tpu.memory_space<vmem>>, vector<1x1xf32>
    %25 = vector.broadcast %24 : vector<1x1xf32> to vector<8x1xf32>
    %26 = arith.addf %23, %25 : vector<8x1xf32>
    %27 = tpu.transpose %26, [1, 0] : vector<8x1xf32> -> vector<1x8xf32>
    %c0_17 = arith.constant 0 : index
    %c0_18 = arith.constant 0 : index
    %28 = vector.load %arg8[%c0_17, %c0_18] : memref<1x8xf32, #tpu.memory_space<vmem>>, vector<1x8xf32>
    tpu.vector_store %arg8[%c0_17, %c0_18], %27 {strides = array<i32>} : memref<1x8xf32, #tpu.memory_space<vmem>>, vector<1x8xf32>,
    return
  }
  func.func @transform_0(%arg0: i32) -> (i32, i32) {
    %c0_i32 = arith.constant 0 : i32
    %c0_i32_0 = arith.constant 0 : i32
    return %arg0, %c0_i32 : i32, i32
  }
  func.func @transform_1(%arg0: i32) -> (i32, i32) {
    %c0_i32 = arith.constant 0 : i32
    %c0_i32_0 = arith.constant 0 : i32
    %c0_i32_1 = arith.constant 0 : i32
    return %c0_i32, %c0_i32_0 : i32, i32
  }
  func.func @transform_2(%arg0: i32) -> (i32, i32) {
    %c0_i32 = arith.constant 0 : i32
    %c0_i32_0 = arith.constant 0 : i32
    %c0_i32_1 = arith.constant 0 : i32
    return %c0_i32, %c0_i32_0 : i32, i32
  }
  func.func @transform_3(%arg0: i32) -> (i32, i32) {
    %c0_i32 = arith.constant 0 : i32
    %c0_i32_0 = arith.constant 0 : i32
    %c0_i32_1 = arith.constant 0 : i32
    return %c0_i32, %c0_i32_0 : i32, i32
  }
  func.func @transform_4(%arg0: i32) -> (i32, i32) {
    %c0_i32 = arith.constant 0 : i32
    %c0_i32_0 = arith.constant 0 : i32
    %c0_i32_1 = arith.constant 0 : i32
    return %c0_i32, %c0_i32_0 : i32, i32
  }
  func.func @transform_5(%arg0: i32) -> (i32, i32) {
    %c0_i32 = arith.constant 0 : i32
    %c0_i32_0 = arith.constant 0 : i32
    %c0_i32_1 = arith.constant 0 : i32
    return %c0_i32, %c0_i32_0 : i32, i32
  }
  func.func @transform_6(%arg0: i32) -> (i32, i32) {
    %c0_i32 = arith.constant 0 : i32
    %c0_i32_0 = arith.constant 0 : i32
    %c0_i32_1 = arith.constant 0 : i32
    return %c0_i32, %c0_i32_0 : i32, i32
  }
  func.func @transform_7(%arg0: i32) -> (i32, i32) {
    %c0_i32 = arith.constant 0 : i32
    %c0_i32_0 = arith.constant 0 : i32
    return %c0_i32, %arg0 : i32, i32
  }
}

</mosaic_0001>

<bundles_post_ra>
// kernel: tpu_custom_call.1
= control target key start
LH: loop header
LB: loop body
LE: loop exit
PB: predicated region body
PF: predicated region fallthrough
CT: control target
= control target key end

     0   :  { %s855_s0 = inlined_call_operand.hbm [shape: f32[8,24], index: 0, kind: input, shape index: {}]   ;;  %s856_s1 = inlined_call_operand.hbm [shape: bf16[24,256], index: 1, kind: input, shape index: {}]   ;;  %s857_s2 = inlined_call_operand.vmem [shape: bf16[1,256], index: 2, kind: input, shape index: {}]   ;;  %s858_s3 = inlined_call_operand.hbm [shape: bf16[256,256], index: 3, kind: input, shape index: {}]   ;;  %s859_s4 = inlined_call_operand.vmem [shape: bf16[1,256], index: 4, kind: input, shape index: {}]   ;;  %s860_s5 = inlined_call_operand.vmem [shape: f32[1,256], index: 5, kind: input, shape index: {}]   ;;  %s861_s6 = inlined_call_operand.<no memory space> [shape: f32[1,1], index: 6, kind: input, shape index: {}]   ;;  %s862_s7 = inlined_call_operand.hbm [shape: f32[1,8], index: 7, kind: output, shape index: {}]  }
   0x1   :  { %v12_v0 = vstv %s861_s6 }
   0x2   :  { %13 = vst [vmem:[#allocation2] sm:$0x1] %v12_v0 }
   0x3   :  { %14 = vsyncpa [#allocation4], 0 }
   0x4   :  { %15 = vsyncpa [#allocation7], 0 }
   0x5   :  { %16 = vsyncpa [#allocation5], 0  ;;  %s736_s26 = smov [#allocation6]   ;;  %s642_s30 = scalar_lea.hbm %s856_s1, 384 }
   0x6   :  { %s32_s27 = sshll.u32 %s736_s26, 4  ;;  %p643_p0 = scmp.ne.s32.totalorder %s856_s1, %s642_s30  ;;  %s33_s27 = int_to_ptr.vmem [resolvable:$true] %s32_s27 }
   0x7   :  { %p646_p1 = scmp.lt.u32.totalorder %s642_s30, %s856_s1 }
   0x9   :  { %p648_p2 = pnand %p646_p1, %p643_p0 }
   0xb   :  { %651 = shalt.err (!%p648_p2)
}
   0xc   :  { %s652_s6 = scalar_lea.vmem %s33_s27, 384  ;;  %p657_p4 = scmp.lt.s32.totalorder %s33_s27, %s33_s27 }
   0xd   :  { %p653_p3 = scmp.ne.s32.totalorder %s33_s27, %s652_s6  ;;  %p658_p5 = scmp.lt.s32.totalorder %s652_s6, %s652_s6 }
   0xf   :  { %p659_p6 = por %p658_p5, %p657_p4 }
  0x11   :  { %p660_p7 = pnand %p659_p6, %p653_p3 }
  0x13   :  { %663 = shalt.err (!%p660_p7)
}
  0x14   :  { %s737_s12 = smov 128   ;;  %s738_s13 = smov 8  }
  0x15   :  { %38 = dma.hbm_to_vmem [thread:$0]  %s856_s1, 384, %s33_s27, [#allocation7], %s737_s12, %s737_s12, %s738_s13  }
  0x16   :  { %s739_s16 = smov [#allocation3]   ;;  %s740_s18 = smov [#allocation8]  }
  0x17   :  { %s23_s17 = sshll.u32 %s739_s16, 4  ;;  %s46_s19 = sshll.u32 %s740_s18, 4  ;;  %s24_s17 = int_to_ptr.vmem [resolvable:$true] %s23_s17  ;;  %s47_s19 = int_to_ptr.vmem [resolvable:$true] %s46_s19 }
  0x18   :  { %s664_s22 = scalar_lea.hbm %s855_s0, 128 }
  0x19   :  { %p665_p8 = scmp.ne.s32.totalorder %s855_s0, %s664_s22  ;;  %p668_p9 = scmp.lt.u32.totalorder %s664_s22, %s855_s0 }
  0x1b   :  { %p670_p10 = pnand %p668_p9, %p665_p8 }
  0x1d   :  { %673 = shalt.err (!%p670_p10)
}
  0x1e   :  { %s674_s1 = scalar_lea.vmem %s24_s17, 128  ;;  %p679_p12 = scmp.lt.s32.totalorder %s24_s17, %s24_s17 }
  0x1f   :  { %p675_p11 = scmp.ne.s32.totalorder %s24_s17, %s674_s1  ;;  %p680_p13 = scmp.lt.s32.totalorder %s674_s1, %s674_s1 }
  0x21   :  { %p681_p0 = por %p680_p13, %p679_p12 }
  0x23   :  { %p682_p1 = pnand %p681_p0, %p675_p11 }
  0x25   :  { %685 = shalt.err (!%p682_p1)
}
  0x26   :  { %26 = dma.hbm_to_vmem [thread:$0]  %s855_s0, 128, %s24_s17, [#allocation4]  }
  0x27   :  { %s686_s8 = scalar_lea.hbm %s858_s3, 4096 }
  0x28   :  { %p687_p2 = scmp.ne.s32.totalorder %s858_s3, %s686_s8  ;;  %p690_p3 = scmp.lt.u32.totalorder %s686_s8, %s858_s3 }
  0x2a   :  { %p692_p4 = pnand %p690_p3, %p687_p2 }
  0x2c   :  { %695 = shalt.err (!%p692_p4)
}
  0x2d   :  { %s696_s14 = scalar_lea.vmem %s47_s19, 4096  ;;  %p701_p6 = scmp.lt.s32.totalorder %s47_s19, %s47_s19 }
  0x2e   :  { %p697_p5 = scmp.ne.s32.totalorder %s47_s19, %s696_s14  ;;  %p702_p7 = scmp.lt.s32.totalorder %s696_s14, %s696_s14 }
  0x30   :  { %p703_p8 = por %p702_p7, %p701_p6 }
  0x32   :  { %p704_p9 = pnand %p703_p8, %p697_p5 }
  0x34   :  { %707 = shalt.err (!%p704_p9)
}
  0x35   :  { %52 = dma.hbm_to_vmem [thread:$0]  %s858_s3, 4096, %s47_s19, [#allocation7], %s737_s12, %s737_s12, %s738_s13  }
  0x36   :  { %730 = dma.done.wait [#allocation4], 128  }
  0x37   :  { %731 = vsyncadd [#allocation4], 4294967168 }
  0x38   :  { %732 = dma.done.wait [#allocation7], 4480  }
  0x39   :  { %733 = vsyncadd [#allocation7], 4294962816  ;;  %v741_v1 = vmov 0   ;;  %v589_v2 = vld [vmem:[#allocation6 + $0x4] ss:$8 sps:$4 sm:$0xff]   ;;  %v73_v4 = vld [vmem:[#allocation6 + $0x10] sm:$0xff]  ;;  %v156_v44 = vlaneseq }
  0x3a   :  { %132 = vmatprep.mubr.bf16.mxu0 %v741_v1  ;;  %v591_v3 = vld [vmem:[#allocation6] ss:$8 sps:$4 sm:$0xff]   ;;  %vm93_vm0 = vcmask 1043456   ;;  %v69_v5 = vld [vmem:[#allocation3] sm:$0xff]  ;;  %100 = vmatprep.subr.bf16.mxu0 %v589_v2  ;;  %v542_v6 = vcombine.high %v73_v4, %v73_v4  ;;  %v541_v7 = vcombine.low %v73_v4, %v73_v4  ;;  %v597_v11 = vld [vmem:[#allocation8 + $0x14] ss:$8 sps:$4 sm:$0xff]  }
  0x3b   :  { %v594_v8 = vld [vmem:[#allocation8 + $0x4] ss:$8 sps:$4 sm:$0xff]   ;;  %101 = vmatpush1.bf16.msra.mxu0 %v591_v3  ;;  %v596_v9 = vld [vmem:[#allocation8] ss:$8 sps:$4 sm:$0xff]   ;;  %v599_v12 = vld [vmem:[#allocation8 + $0x10] ss:$8 sps:$4 sm:$0xff]   ;;  %v70_v13 = vpack.c.bf16 %v69_v5, %v69_v5 }
  0x3c   :  { %543 = vmatprep.subr.msk.bf16.mxu0 %vm93_vm0, %v542_v6  ;;  %v95_v10 = vsel %vm93_vm0, %v541_v7, 0  ;;  %377 = vmatprep.subr.bf16.mxu1 %v594_v8  ;;  %v600_v14 = vld [vmem:[#allocation8 + $0x24] ss:$8 sps:$4 sm:$0xff]   ;;  %vm89_vm1 = vcmask 195584   ;;  %v602_v15 = vld [vmem:[#allocation8 + $0x20] ss:$8 sps:$4 sm:$0xff]  }
  0x3d   :  { %378 = vmatpush1.bf16.msra.mxu1 %v596_v9  ;;  %v603_v16 = vld [vmem:[#allocation8 + $0x34] ss:$8 sps:$4 sm:$0xff]   ;;  %v605_v17 = vld [vmem:[#allocation8 + $0x30] ss:$8 sps:$4 sm:$0xff]   ;;  %v606_v18 = vld [vmem:[#allocation8 + $0x44] ss:$8 sps:$4 sm:$0xff]  }
  0x3e   :  { %379 = vmatprep.subr.bf16.mxu1 %v597_v11  ;;  %v608_v19 = vld [vmem:[#allocation8 + $0x40] ss:$8 sps:$4 sm:$0xff]   ;;  %v609_v20 = vld [vmem:[#allocation8 + $0x54] ss:$8 sps:$4 sm:$0xff]   ;;  %v611_v21 = vld [vmem:[#allocation8 + $0x50] ss:$8 sps:$4 sm:$0xff]  }
  0x3f   :  { %103 = vmatpush1.bf16.msra.mxu0 %v95_v10  ;;  %v612_v22 = vld [vmem:[#allocation8 + $0x64] ss:$8 sps:$4 sm:$0xff]   ;;  %v614_v23 = vld [vmem:[#allocation8 + $0x60] ss:$8 sps:$4 sm:$0xff]   ;;  %v615_v24 = vld [vmem:[#allocation8 + $0x74] ss:$8 sps:$4 sm:$0xff]  }
  0x40   :  { %v617_v25 = vld [vmem:[#allocation8 + $0x70] ss:$8 sps:$4 sm:$0xff]   ;;  %v618_v26 = vld [vmem:[#allocation8 + $0x84] ss:$8 sps:$4 sm:$0xff]   ;;  %v620_v27 = vld [vmem:[#allocation8 + $0x80] ss:$8 sps:$4 sm:$0xff]  }
  0x41   :  { %380 = vmatpush1.bf16.msra.mxu1 %v599_v12  ;;  %v621_v28 = vld [vmem:[#allocation8 + $0x94] ss:$8 sps:$4 sm:$0xff]   ;;  %v623_v29 = vld [vmem:[#allocation8 + $0x90] ss:$8 sps:$4 sm:$0xff]   ;;  %v624_v30 = vld [vmem:[#allocation8 + $0xa4] ss:$8 sps:$4 sm:$0xff]  }
  0x42   :  { %544 = vmatmul.mubr.msk.bf16.vlgmr.msra.gmra.mrb[0].mxu0 %vm89_vm1, %v70_v13  ;;  %381 = vmatprep.subr.bf16.mxu1 %v600_v14  ;;  %v626_v31 = vld [vmem:[#allocation8 + $0xa0] ss:$8 sps:$4 sm:$0xff]   ;;  %v627_v32 = vld [vmem:[#allocation8 + $0xb4] ss:$8 sps:$4 sm:$0xff]   ;;  %v629_v33 = vld [vmem:[#allocation8 + $0xb0] ss:$8 sps:$4 sm:$0xff]  }
  0x43   :  { %v630_v34 = vld [vmem:[#allocation8 + $0xc4] ss:$8 sps:$4 sm:$0xff]   ;;  %v632_v35 = vld [vmem:[#allocation8 + $0xc0] ss:$8 sps:$4 sm:$0xff]   ;;  %v633_v36 = vld [vmem:[#allocation8 + $0xd4] ss:$8 sps:$4 sm:$0xff]  }
  0x44   :  { %v635_v37 = vld [vmem:[#allocation8 + $0xd0] ss:$8 sps:$4 sm:$0xff]   ;;  %v636_v38 = vld [vmem:[#allocation8 + $0xe4] ss:$8 sps:$4 sm:$0xff]   ;;  %v638_v39 = vld [vmem:[#allocation8 + $0xe0] ss:$8 sps:$4 sm:$0xff]  }
  0x45   :  { %382 = vmatpush1.bf16.msra.mxu1 %v602_v15  ;;  %v639_v40 = vld [vmem:[#allocation8 + $0xf4] ss:$8 sps:$4 sm:$0xff]   ;;  %v641_v41 = vld [vmem:[#allocation8 + $0xf0] ss:$8 sps:$4 sm:$0xff]   ;;  %v742_v42 = vmov 1966171168  }
  0x46   :  { %383 = vmatprep.subr.bf16.mxu1 %v603_v16  ;;  %v154_v43 = vunpack.c.l.s4 %v742_v42  ;;  %v157_v46 = vshrl.u32 %v156_v44, 7  ;;  %v545_v47 = vld.sshfl [vmem:[%s857_s2] sm:$0x11 pattern:$0x75316420]  ;;  %vm521_vm2 = vcmask 57344  }
  0x47   :  { %v152_v49 = vcombine.high %v545_v47, %v545_v47  ;;  %v578_v4 = vld.sshfl [vmem:[%s859_s4] sm:$0x11 pattern:$0x75316420]  ;;  %s743_s4 = smov [#allocation9]  }
  0x48   :  { %v155_v45 = vunpack.c.0.s8 %v154_v43  ;;  %v172_v53 = vsub.s32 0, %v157_v46  ;;  %v429_v5 = vcombine.high %v578_v4, %v578_v4 }
  0x49   :  { %384 = vmatpush1.bf16.msra.mxu1 %v605_v17  ;;  %v464_v17 = vld [vmem:[%s860_s5] sm:$0x3]  ;;  %s529_s5 = sshll.u32 %s743_s4, 4  ;;  %s530_s5 = int_to_ptr.vmem [resolvable:$true] %s529_s5 }
  0x4a   :  { %385 = vmatprep.subr.bf16.mxu1 %v606_v18  ;;  %v158_v48 = vsub.s32 %v155_v45, %v157_v46  ;;  %v472_v18 = vsub.s32 1, %v157_v46  ;;  %s708_s18 = scalar_lea.vmem %s530_s5, 16  ;;  %s712_s19 = scalar_lea.vmem %s530_s5, 32 }
  0x4b   :  { %p709_p10 = scmp.ne.s32.totalorder %s530_s5, %s708_s18  ;;  %p713_p11 = scmp.lt.s32.totalorder %s530_s5, %s530_s5 }
  0x4c   :  { %v159_v50 = vrot.slane %v545_v47, %v158_v48  ;;  %v166_v51 = vrot.slane %v152_v49, %v158_v48  ;;  %v436_v6 = vrot.slane %v578_v4, %v158_v48  ;;  %v443_v7 = vrot.slane %v429_v5, %v158_v48  ;;  %p714_p12 = scmp.lt.s32.totalorder %s712_s19, %s708_s18 }
  0x4d   :  { %386 = vmatpush1.bf16.msra.mxu1 %v608_v19 }
  0x4e   :  { %387 = vmatprep.subr.bf16.mxu1 %v609_v20  ;;  %v168_v52 = vpack.i.b16 %v159_v50, %v159_v50  ;;  %v175_v54 = vpack.i.b16 %v166_v51, %v166_v51  ;;  %v445_v8 = vpack.i.b16 %v436_v6, %v436_v6  ;;  %v452_v9 = vpack.i.b16 %v443_v7, %v443_v7  ;;  %p715_p13 = por %p714_p12, %p713_p11 }
  0x50   :  { %v173_v55 = vrot.slane %v168_v52, %v172_v53  ;;  %v180_v57 = vrot.slane %v175_v54, %v172_v53  ;;  %v450_v10 = vrot.slane %v445_v8, %v172_v53  ;;  %v457_v12 = vrot.slane %v452_v9, %v172_v53  ;;  %p716_p0 = pnand %p715_p13, %p709_p10 }
  0x51   :  { %388 = vmatpush1.bf16.msra.mxu1 %v611_v21 }
  0x52   :  { %389 = vmatprep.subr.bf16.mxu1 %v612_v22 }
  0x55   :  { %390 = vmatpush1.bf16.msra.mxu1 %v614_v23  ;;  %v469_v23 = vrot.slane %v464_v17, %v172_v53 }
  0x56   :  { %391 = vmatprep.subr.bf16.mxu1 %v615_v24 }
  0x59   :  { %392 = vmatpush1.bf16.msra.mxu1 %v617_v25  ;;  %v473_v25 = vrot.slane %v464_v17, %v472_v18 }
  0x5a   :  { %393 = vmatprep.subr.bf16.mxu1 %v618_v26 }
  0x5d   :  { %394 = vmatpush1.bf16.msra.mxu1 %v620_v27 }
  0x5e   :  { %395 = vmatprep.subr.bf16.mxu1 %v621_v28 }
  0x61   :  { %396 = vmatpush1.bf16.msra.mxu1 %v623_v29 }
  0x62   :  { %397 = vmatprep.subr.bf16.mxu1 %v624_v30 }
  0x65   :  { %398 = vmatpush1.bf16.msra.mxu1 %v626_v31  ;;  %v579_v31 = vld [vmem:[#allocation2] ss:$0 sm:$0xff] }
  0x66   :  { %399 = vmatprep.subr.bf16.mxu1 %v627_v32 }
  0x69   :  { %400 = vmatpush1.bf16.msra.mxu1 %v629_v33 }
  0x6a   :  { %401 = vmatprep.subr.bf16.mxu1 %v630_v34 }
  0x6d   :  { %402 = vmatpush1.bf16.msra.mxu1 %v632_v35 }
  0x6e   :  { %403 = vmatprep.subr.bf16.mxu1 %v633_v36 }
  0x71   :  { %404 = vmatpush1.bf16.msra.mxu1 %v635_v37 }
  0x72   :  { %405 = vmatprep.subr.bf16.mxu1 %v636_v38 }
  0x75   :  { %406 = vmatpush1.bf16.msra.mxu1 %v638_v39 }
  0x76   :  { %407 = vmatprep.subr.bf16.mxu1 %v639_v40 }
  0x79   :  { %408 = vmatpush1.bf16.msra.mxu1 %v641_v41 }
 0x115   :  { %v134_v56 = vpop.f32.mrb[0].mxu0 }
 0x116   :  { %v141_v58 = vpack.c.bf16 %v134_v56, %v134_v56  ;;  %v136_v59 = vpop.f32.mrb[1].mxu0 }
 0x117   :  { %v142_v60 = vpack.c.bf16 %v136_v59, %v136_v59  ;;  %v138_v61 = vpop.f32.mrb[2].mxu0 }
 0x118   :  { %v181_v62 = vadd.bf16 %v173_v55, %v141_v58  ;;  %v139_v63 = vpop.f32.mrb[3].mxu0 }
 0x119   :  { %v182_v0 = vadd.bf16 %v180_v57, %v142_v60 }
 0x11a   :  { %v183_v3 = vmax.bf16 %v741_v1, %v181_v62 }
 0x11b   :  { %v184_v2 = vmax.bf16 %v741_v1, %v182_v0 }
 0x11d   :  { %409 = vmatprep.mubr.bf16.mxu1 %v184_v2 }
 0x11e   :  { %410 = vmatmul.mubr.bf16.vlgmr.msra.gmra.mrb[0].mxu1 %v183_v3 }
 0x1f1   :  { %v411_v11 = vpop.f32.mrb[0].mxu1 }
 0x1f2   :  { %v418_v13 = vpack.c.bf16 %v411_v11, %v411_v11  ;;  %v413_v14 = vpop.f32.mrb[1].mxu1 }
 0x1f3   :  { %v419_v15 = vpack.c.bf16 %v413_v14, %v413_v14  ;;  %v415_v16 = vpop.f32.mrb[2].mxu1 }
 0x1f4   :  { %v458_v19 = vadd.bf16 %v450_v10, %v418_v13  ;;  %v416_v20 = vpop.f32.mrb[3].mxu1 }
 0x1f5   :  { %v459_v21 = vadd.bf16 %v457_v12, %v419_v15 }
 0x1f6   :  { %v460_v22 = vmax.bf16 %v741_v1, %v458_v19 }
 0x1f7   :  { %v461_v24 = vmax.bf16 %v741_v1, %v459_v21 }
 0x1f8   :  { %v462_v26 = vunpack.c.l.bf16 %v460_v22 }
 0x1f9   :  { %v463_v27 = vunpack.c.l.bf16 %v461_v24 }
 0x1fa   :  { %v476_v28 = vmul.f32 %v469_v23, %v462_v26 }
 0x1fb   :  { %v477_v29 = vmul.f32 %v473_v25, %v463_v27 }
 0x1fd   :  { %v478_v30 = vadd.f32 %v477_v29, %v476_v28 }
 0x1ff   :  { %479 = vadd.xlane.f32.xlu0 %v478_v30 }
 0x28c   :  { %v480_v32 = vpop.xlane.xlu0 %479 }
 0x28d   :  { %v488_v33 = vadd.f32 %v579_v31, %v480_v32 }
 0x28f   :  { %489 = vxpose.xlu0.b32.start.end [1/1] (short) (narrow) %v488_v33, 8 }
 0x30f   :  { %v505_v34 = vpop.trf.xlu0 }
 0x310   :  { %522 = vst.msk [vmem:[#allocation9] sm:$0x1] %vm521_vm2, %v505_v34 }
 0x311   :  { %719 = shalt.err (!%p716_p0)
}
 0x312   :  { %s720_s22 = scalar_lea.hbm %s862_s7, 16 }
 0x313   :  { %p721_p1 = scmp.ne.s32.totalorder %s862_s7, %s720_s22  ;;  %p724_p2 = scmp.lt.u32.totalorder %s720_s22, %s862_s7 }
 0x315   :  { %p726_p3 = pnand %p724_p2, %p721_p1 }
 0x317   :  { %729 = shalt.err (!%p726_p3)
}
 0x318   :  { %532 = dma.vmem_to_hbm [thread:$0]  %s530_s5, 16, %s862_s7, [#allocation5]  }
 0x319   :  { %734 = dma.done.wait [#allocation5], 16  }
 0x31a   :  { %735 = vsyncadd [#allocation5], 4294967280 }
 0x31b   :  { %536 = vsyncpa [#allocation4], 1 }
 0x31c   :  { %537 = vsyncpa [#allocation7], 1 }
 0x31d   :  { %538 = vsyncpa [#allocation5], 1 }

</bundles_post_ra>
